<compile_context>
chip_gen: v5e
topology: v5e:2x2
jax: 0.10.0
libtpu: 0.0.40
codegen_flags: <defaults>
</compile_context>

<pallas_src>
import jax
import jax.numpy as jnp
from jax.experimental import pallas as pl
from jax.experimental.pallas import tpu as pltpu

HIDDEN_SIZE = 48
DEFAULT_BLOCK_B = 4096   # batch rows per grid step (lane-axis block, VMEM-cheap)


def _round_up(x, m):
    return ((x + m - 1) // m) * m


def critic_kernel(x_ref, w1t_ref, b1_ref, w2_ref, b2_ref, o_ref):
    # x:   (obs, bB)   activations, batch on the lane axis
    # w1t: (H, obs)    first-layer weight, transposed -> h = w1t @ x
    # b1:  (H, 1)      broadcast over lanes
    # w2:  (H, 1)      broadcast over lanes
    # b2:  (1, 1)      scalar in SMEM
    # o:   (1, bB)     lane-dense output row
    h = jnp.dot(w1t_ref[...], x_ref[...], preferred_element_type=jnp.float32)
    h = jnp.maximum(h + b1_ref[...], 0.0)                   # ReLU on VPU, (H, bB)
    # Second layer: single output column -> VPU multiply + sublane reduce (XLU),
    # avoids an MXU round trip that would be <1% utilized.
    v = jnp.sum(h * w2_ref[...], axis=0, keepdims=True)     # (1, bB)
    o_ref[...] = (v + b2_ref[0, 0]).astype(o_ref.dtype)


def critic_forward(x, w1, b1, w2, b2, *, block_b=DEFAULT_BLOCK_B):
    """x: (B, obs_size) float32 -> (B, 1, 1) float32 (same as PyTorch Critic)."""
    B, obs = x.shape
    H = w1.shape[1]

    # Batch block on the lane axis: multiple of 128, capped at block_b.
    bB = min(block_b, _round_up(B, 128))
    B_pad = _round_up(B, bB)
    n_blocks = B_pad // bB

    # Layout plumbing (cheap relative to streaming x from HBM at large B).
    xt = jnp.pad(x.T, ((0, 0), (0, B_pad - B)))      # (obs, B_pad)
    w1t = w1.T                                       # (H, obs)
    b1c = b1.reshape(H, 1)
    w2c = w2.reshape(H, 1)
    b2s = b2.reshape(1, 1)

    flops = 2 * B_pad * obs * H + 3 * B_pad * H
    bytes_accessed = 4 * (obs * B_pad + B_pad + obs * H + 2 * H + 1)

    out = pl.pallas_call(
        critic_kernel,
        out_shape=jax.ShapeDtypeStruct((1, B_pad), jnp.float32),
        grid=(n_blocks,),
        in_specs=[
            pl.BlockSpec((obs, bB), lambda i: (0, i)),          # stream x
            pl.BlockSpec((H, obs), lambda i: (0, 0)),           # resident weights
            pl.BlockSpec((H, 1), lambda i: (0, 0)),
            pl.BlockSpec((H, 1), lambda i: (0, 0)),
            pl.BlockSpec(memory_space=pltpu.MemorySpace.SMEM),  # scalar b2
        ],
        out_specs=pl.BlockSpec((1, bB), lambda i: (0, i)),
        compiler_params=pltpu.CompilerParams(
            dimension_semantics=("parallel",),
        ),
        cost_estimate=pl.CostEstimate(
            flops=flops, transcendentals=0, bytes_accessed=bytes_accessed),
    )(xt, w1t, b1c, w2c, b2s)

    # PyTorch forward returns (B, 1, 1) because of unsqueeze(dim=1).
    return out[0, :B].reshape(B, 1, 1)


def critic_reference(x, w1, b1, w2, b2):
    h = jnp.maximum(x @ w1 + b1, 0.0)
    return (h @ w2 + b2).reshape(x.shape[0], 1, 1)


def init_params(key, obs_size, hidden):
    # Deterministic synthetic init (shapes from the module's __init__).
    k1, k2, k3, k4 = jax.random.split(key, 4)
    lim1 = 1.0 / jnp.sqrt(obs_size)
    lim2 = 1.0 / jnp.sqrt(hidden)
    w1 = jax.random.uniform(k1, (obs_size, hidden), jnp.float32, -lim1, lim1)
    b1 = jax.random.uniform(k2, (hidden,), jnp.float32, -lim1, lim1)
    w2 = jax.random.uniform(k3, (hidden, 1), jnp.float32, -lim2, lim2)
    b2 = jax.random.uniform(k4, (1,), jnp.float32, -lim2, lim2)
    return w1, b1, w2, b2


if __name__ == "__main__":
    key = jax.random.PRNGKey(0)
    kx, kp, kx2 = jax.random.split(key, 3)

    OBS_SIZE = 8     # field1d-v0 observation vector length (synthetic)
    B = 4            # small batch matching the original usage

    w1, b1, w2, b2 = init_params(kp, OBS_SIZE, HIDDEN_SIZE)

    # Tiny-batch case (original problem size).
    x = jax.random.normal(kx, (B, OBS_SIZE), jnp.float32)
    out = jax.block_until_ready(critic_forward(x, w1, b1, w2, b2))
    ref = critic_reference(x, w1, b1, w2, b2)
    assert out.shape == (B, 1, 1)
    assert jnp.allclose(out, ref, atol=1e-5, rtol=1e-5)

    # Larger, non-multiple batch with a small block: exercises multi-step grid,
    # resident weights across grid steps, and the padded remainder handling.
    B2 = 300
    x2 = jax.random.normal(kx2, (B2, OBS_SIZE), jnp.float32)
    out2 = jax.block_until_ready(critic_forward(x2, w1, b1, w2, b2, block_b=128))
    ref2 = critic_reference(x2, w1, b1, w2, b2)
    assert out2.shape == (B2, 1, 1)
    assert jnp.allclose(out2, ref2, atol=1e-5, rtol=1e-5)

    print("KERNEL_OK")
</pallas_src>

<mosaic_0001>
module attributes {stable_mosaic.version = 11 : i64} {
  func.func @critic_kernel(%arg0: i32, %arg1: memref<8x128xf32, #tpu.memory_space<vmem>>, %arg2: memref<48x8xf32, #tpu.memory_space<vmem>>, %arg3: memref<48x1xf32, #tpu.memory_space<vmem>>, %arg4: memref<48x1xf32, #tpu.memory_space<vmem>>, %arg5: memref<1x1xf32, #tpu.memory_space<smem>>, %arg6: memref<1x128xf32, #tpu.memory_space<vmem>>) attributes {dimension_semantics = [#tpu.dimension_semantics<parallel>], iteration_bounds = array<i64: 1>, scalar_prefetch = 0 : i64, scratch_operands = 0 : i64, tpu.core_type = #tpu.core_type<tc>, window_params = [{transform_indices = @transform_0, window_bounds = array<i64: 8, 128>}, {pipeline_mode = #tpu.pipeline_mode<synchronous>, transform_indices = @transform_1, window_bounds = array<i64: 48, 8>}, {pipeline_mode = #tpu.pipeline_mode<synchronous>, transform_indices = @transform_2, window_bounds = array<i64: 48, 1>}, {pipeline_mode = #tpu.pipeline_mode<synchronous>, transform_indices = @transform_3, window_bounds = array<i64: 48, 1>}, {transform_indices = @transform_4, window_bounds = array<i64: 1, 1>}, {transform_indices = @transform_5, window_bounds = array<i64: 1, 128>}]} {
    %c0 = arith.constant 0 : index
    %c0_0 = arith.constant 0 : index
    %0 = vector.load %arg2[%c0, %c0_0] : memref<48x8xf32, #tpu.memory_space<vmem>>, vector<48x8xf32>
    %c0_1 = arith.constant 0 : index
    %c0_2 = arith.constant 0 : index
    %1 = vector.load %arg1[%c0_1, %c0_2] : memref<8x128xf32, #tpu.memory_space<vmem>>, vector<8x128xf32>
    %cst = arith.constant dense<0.000000e+00> : vector<48x128xf32>
    %2 = tpu.matmul %0, %1, %cst {dimension_numbers = #tpu.dot_dimension_numbers<[1], [0], [0], [1], [0, 0, 1, 1], [], []>} : vector<48x8xf32>, vector<8x128xf32>, vector<48x128xf32> -> vector<48x128xf32>
    %c0_3 = arith.constant 0 : index
    %c0_4 = arith.constant 0 : index
    %3 = vector.load %arg3[%c0_3, %c0_4] : memref<48x1xf32, #tpu.memory_space<vmem>>, vector<48x1xf32>
    %4 = vector.broadcast %3 : vector<48x1xf32> to vector<48x128xf32>
    %5 = arith.addf %2, %4 : vector<48x128xf32>
    %cst_5 = arith.constant 0.000000e+00 : f32
    %6 = vector.broadcast %cst_5 : f32 to vector<48x128xf32>
    %7 = arith.maximumf %5, %6 : vector<48x128xf32>
    %c0_6 = arith.constant 0 : index
    %c0_7 = arith.constant 0 : index
    %8 = vector.load %arg4[%c0_6, %c0_7] : memref<48x1xf32, #tpu.memory_space<vmem>>, vector<48x1xf32>
    %9 = vector.broadcast %8 : vector<48x1xf32> to vector<48x128xf32>
    %10 = arith.mulf %7, %9 : vector<48x128xf32>
    %cst_8 = arith.constant dense<0.000000e+00> : vector<128xf32>
    %11 = vector.multi_reduction <add>, %10, %cst_8 [0] : vector<48x128xf32> to vector<128xf32>
    %12 = vector.shape_cast %11 : vector<128xf32> to vector<1x128xf32>
    %c0_9 = arith.constant 0 : index
    %c0_10 = arith.constant 0 : index
    %13 = memref.load %arg5[%c0_9, %c0_10] : memref<1x1xf32, #tpu.memory_space<smem>>
    %14 = vector.broadcast %13 : f32 to vector<1x128xf32>
    %15 = arith.addf %12, %14 : vector<1x128xf32>
    %c0_11 = arith.constant 0 : index
    %c0_12 = arith.constant 0 : index
    %16 = vector.load %arg6[%c0_11, %c0_12] : memref<1x128xf32, #tpu.memory_space<vmem>>, vector<1x128xf32>
    tpu.vector_store %arg6[%c0_11, %c0_12], %15 {strides = array<i32>} : memref<1x128xf32, #tpu.memory_space<vmem>>, vector<1x128xf32>,
    return
  }
  func.func @transform_0(%arg0: i32) -> (i32, i32) {
    %c0_i32 = arith.constant 0 : i32
    %c0_i32_0 = arith.constant 0 : i32
    return %c0_i32, %arg0 : i32, i32
  }
  func.func @transform_1(%arg0: i32) -> (i32, i32) {
    %c0_i32 = arith.constant 0 : i32
    %c0_i32_0 = arith.constant 0 : i32
    %c0_i32_1 = arith.constant 0 : i32
    return %c0_i32, %c0_i32_0 : i32, i32
  }
  func.func @transform_2(%arg0: i32) -> (i32, i32) {
    %c0_i32 = arith.constant 0 : i32
    %c0_i32_0 = arith.constant 0 : i32
    %c0_i32_1 = arith.constant 0 : i32
    return %c0_i32, %c0_i32_0 : i32, i32
  }
  func.func @transform_3(%arg0: i32) -> (i32, i32) {
    %c0_i32 = arith.constant 0 : i32
    %c0_i32_0 = arith.constant 0 : i32
    %c0_i32_1 = arith.constant 0 : i32
    return %c0_i32, %c0_i32_0 : i32, i32
  }
  func.func @transform_4(%arg0: i32) -> (i32, i32) {
    %c0_i32 = arith.constant 0 : i32
    %c0_i32_0 = arith.constant 0 : i32
    %c0_i32_1 = arith.constant 0 : i32
    return %c0_i32, %c0_i32_0 : i32, i32
  }
  func.func @transform_5(%arg0: i32) -> (i32, i32) {
    %c0_i32 = arith.constant 0 : i32
    %c0_i32_0 = arith.constant 0 : i32
    return %c0_i32, %arg0 : i32, i32
  }
}

</mosaic_0001>

<bundles_post_ra>
// kernel: tpu_custom_call.1
= control target key start
LH: loop header
LB: loop body
LE: loop exit
PB: predicated region body
PF: predicated region fallthrough
CT: control target
= control target key end

     0   :  { %v238_v1 = vmov 0   ;;  %vm65_vm0 = vcmask 64512   ;;  %s339_s0 = inlined_call_operand.vmem [shape: f32[8,128], index: 0, kind: input, shape index: {}]   ;;  %s340_s1 = inlined_call_operand.vmem [shape: f32[48,8], index: 1, kind: input, shape index: {}]   ;;  %s341_s2 = inlined_call_operand.vmem [shape: f32[48,1], index: 2, kind: input, shape index: {}]   ;;  %s342_s3 = inlined_call_operand.vmem [shape: f32[48,1], index: 3, kind: input, shape index: {}]   ;;  %s343_s4 = inlined_call_operand.<no memory space> [shape: f32[1,1], index: 4, kind: input, shape index: {}]   ;;  %s344_s5 = inlined_call_operand.hbm [shape: f32[1,128], index: 5, kind: output, shape index: {}]  }
   0x1   :  { %v28_v0 = vld [vmem:[%s339_s0] sm:$0xff]  ;;  %210 = vset.pattern.permute.xlu1 %v238_v1  ;;  %209 = vset.pattern.permute.xlu0 %v238_v1  ;;  %v31_v2 = vld [vmem:[%s341_s2 + $0x10] sm:$0xff]  ;;  %v23_v5 = vld [vmem:[%s340_s1 + $0x8] sm:$0xff] }
   0x2   :  { %v29_v3 = vld [vmem:[%s341_s2] sm:$0xff]  ;;  %99 = vmatpush.msra.mxu0 %v28_v0  ;;  %204 = vmatpush.msra.mxu1 %v28_v0  ;;  %v25_v6 = vld [vmem:[%s340_s1 + $0x18] sm:$0xff]  ;;  %v27_v7 = vld [vmem:[%s340_s1 + $0x28] sm:$0xff] }
   0x3   :  { %v22_v4 = vld [vmem:[%s340_s1] sm:$0xff]  ;;  %205 = vmatpush.msra.mxu2 %v28_v0  ;;  %206 = vmatpush.msra.mxu3 %v28_v0 }
   0x4   :  { %47 = vperm.xlu1 %210, %v31_v2   ;;  %37 = vperm.xlu0 %209, %v29_v3   ;;  %v125_v8 = vld [vmem:[%s342_s3] sm:$0xff] }
   0x5   :  { %198 = vmatmul.msk.f32.vlgmr.msra.gmra.mxu0 %vm65_vm0, %v22_v4  ;;  %199 = vmatmul.msk.f32.vlgmr.msra.gmra.mxu1 %vm65_vm0, %v23_v5 }
   0x6   :  { %201 = vmatmul.msk.f32.vlgmr.msra.gmra.mxu2 %vm65_vm0, %v25_v6  ;;  %203 = vmatmul.msk.f32.vlgmr.msra.gmra.mxu3 %vm65_vm0, %v27_v7 }
   0x7   :  { %11 = vsyncpa [#allocation4], 0  ;;  %211 = vset.pattern.permute.xlu2 %v238_v1  ;;  %v32_v9 = vld [vmem:[%s341_s2 + $0x18] sm:$0xff]  ;;  %v30_v10 = vld [vmem:[%s341_s2 + $0x8] sm:$0xff]  ;;  %v179_v2 = vstv %s343_s4  ;;  %s239_s28 = smov [#allocation3]   ;;  %s189_s7 = sshll.u32 %s344_s5, 4  ;;  %s190_s7 = int_to_ptr.hbm [resolvable:$true] %s189_s7 }
   0x8   :  { %133 = vperm.xlu2 %211, %v125_v8   ;;  %v24_v11 = vld [vmem:[%s340_s1 + $0x10] sm:$0xff]  ;;  %v26_v12 = vld [vmem:[%s340_s1 + $0x20] sm:$0xff]  ;;  %v126_v13 = vld [vmem:[%s342_s3 + $0x8] sm:$0xff]  ;;  %s187_s29 = sshll.u32 %s239_s28, 4  ;;  %s188_s29 = int_to_ptr.vmem [resolvable:$true] %s187_s29 }
   0x9   :  { %v127_v14 = vld [vmem:[%s342_s3 + $0x10] sm:$0xff]  ;;  %v33_v15 = vld [vmem:[%s341_s2 + $0x20] sm:$0xff]  ;;  %v34_v16 = vld [vmem:[%s341_s2 + $0x28] sm:$0xff] }
   0xa   :  { %v129_v17 = vld [vmem:[%s342_s3 + $0x20] sm:$0xff]  ;;  %v128_v18 = vld [vmem:[%s342_s3 + $0x18] sm:$0xff]  ;;  %v130_v19 = vld [vmem:[%s342_s3 + $0x28] sm:$0xff] }
   0xc   :  { %52 = vperm.xlu1 %210, %v32_v9   ;;  %42 = vperm.xlu0 %209, %v30_v10  }
   0xd   :  { %200 = vmatmul.msk.f32.gmra.mxu1 %vm65_vm0, %v24_v11 }
   0xe   :  { %202 = vmatmul.msk.f32.gmra.mxu2 %vm65_vm0, %v26_v12 }
  0x10   :  { %138 = vperm.xlu2 %211, %v126_v13  }
  0x14   :  { %143 = vperm.xlu1 %210, %v127_v14   ;;  %57 = vperm.xlu0 %209, %v33_v15  }
  0x18   :  { %62 = vperm.xlu2 %211, %v34_v16  }
  0x1c   :  { %153 = vperm.xlu1 %210, %v129_v17   ;;  %148 = vperm.xlu0 %209, %v128_v18  }
  0x20   :  { %158 = vperm.xlu2 %211, %v130_v19  }
  0x62   :  { %v134_v22 = vpop.permute.xlu2 %133 }
  0x6a   :  { %v139_v27 = vpop.permute.xlu2 %138 }
  0x72   :  { %v63_v40 = vpop.permute.xlu2 %62 }
  0x76   :  { %v38_v20 = vpop.permute.xlu0 %37  ;;  %v48_v21 = vpop.permute.xlu1 %47 }
  0x7a   :  { %v159_v57 = vpop.permute.xlu2 %158 }
  0x7e   :  { %v43_v23 = vpop.permute.xlu0 %42  ;;  %v53_v24 = vpop.permute.xlu1 %52 }
  0x82   :  { %v101_v25 = vpop.f32.mrf.mxu0  ;;  %v104_v26 = vpop.f32.mrf.mxu1 }
  0x83   :  { %v102_v28 = vadd.f32 %v101_v25, %v38_v20  ;;  %v105_v29 = vadd.f32 %v104_v26, %v43_v23 }
  0x85   :  { %v119_v31 = vmax.f32 %v102_v28, 0.0  ;;  %v120_v32 = vmax.f32 %v105_v29, 0.0 }
  0x86   :  { %v58_v30 = vpop.permute.xlu0 %57  ;;  %v144_v35 = vpop.permute.xlu1 %143 }
  0x87   :  { %v161_v37 = vmul.f32 %v134_v22, %v119_v31  ;;  %v162_v38 = vmul.f32 %v139_v27, %v120_v32 }
  0x89   :  { %v110_v33 = vpop.f32.mrf.mxu2  ;;  %v116_v41 = vpop.f32.mrf.mxu3  ;;  %v167_v45 = vadd.f32 %v162_v38, %v161_v37 }
  0x8a   :  { %v107_v34 = vpop.f32.mrf.mxu1  ;;  %v111_v39 = vadd.f32 %v110_v33, %v53_v24  ;;  %v117_v47 = vadd.f32 %v116_v41, %v63_v40 }
  0x8b   :  { %v108_v36 = vadd.f32 %v107_v34, %v48_v21 }
  0x8c   :  { %v122_v46 = vmax.f32 %v111_v39, 0.0  ;;  %v124_v52 = vmax.f32 %v117_v47, 0.0 }
  0x8d   :  { %v121_v42 = vmax.f32 %v108_v36, 0.0 }
  0x8e   :  { %v149_v44 = vpop.permute.xlu0 %148  ;;  %v154_v54 = vpop.permute.xlu1 %153  ;;  %v166_v58 = vmul.f32 %v159_v57, %v124_v52 }
  0x8f   :  { %v163_v43 = vmul.f32 %v144_v35, %v121_v42  ;;  %v164_v49 = vmul.f32 %v149_v44, %v122_v46 }
  0x91   :  { %v113_v48 = vpop.f32.mrf.mxu2  ;;  %v168_v50 = vadd.f32 %v167_v45, %v163_v43 }
  0x92   :  { %v114_v51 = vadd.f32 %v113_v48, %v58_v30 }
  0x93   :  { %v169_v55 = vadd.f32 %v168_v50, %v164_v49 }
  0x94   :  { %v123_v53 = vmax.f32 %v114_v51, 0.0 }
  0x96   :  { %v165_v56 = vmul.f32 %v154_v54, %v123_v53 }
  0x98   :  { %v170_v59 = vadd.f32 %v169_v55, %v165_v56 }
  0x9a   :  { %v171_v60 = vadd.f32 %v170_v59, %v166_v58 }
  0x9c   :  { %v172_v61 = vrot.slane %v171_v60, 4 }
  0x9e   :  { %v173_v62 = vadd.f32 %v172_v61, %v171_v60 }
  0xa0   :  { %v174_v63 = vrot.slane %v173_v62, 2 }
  0xa2   :  { %v175_v0 = vadd.f32 %v174_v63, %v173_v62 }
  0xa4   :  { %v176_v1 = vrot.slane %v175_v0, 1 }
  0xa6   :  { %v177_v3 = vadd.f32 %v176_v1, %v175_v0 }
  0xa8   :  { %v180_v4 = vadd.f32 %v179_v2, %v177_v3 }
  0xaa   :  { %181 = vst [vmem:[#allocation3] sm:$0x1] %v180_v4 }
  0xab   :  { %192 = dma.vmem_to_hbm [thread:$0]  %s188_s29, 16, %s190_s7, [#allocation4]  }
  0xac   :  { %236 = dma.done.wait [#allocation4], 16  }
  0xad   :  { %237 = vsyncadd [#allocation4], 4294967280 }
  0xae   :  { %197 = vsyncpa [#allocation4], 1 }

</bundles_post_ra>
